<compile_context>
chip_gen: v7x
topology: tpu7x:2x2x1
jax: 0.10.0
libtpu: 0.0.40
codegen_flags: <defaults>
</compile_context>

<pallas_src>
import functools

import jax
import jax.numpy as jnp
from jax import lax
from jax.experimental import pallas as pl
from jax.experimental.pallas import tpu as pltpu

NEG_SLOPE = 0.2  # HypergraphConv default negative_slope


def _hgat_kernel(hmt_ref, deg_ref, yaew_ref, nst_ref, xh_ref, bgaew_ref,
                 out_ref, *, heads, feat):
    f32 = jnp.float32
    j = pl.program_id(1)                       # tile index within this core

    @pl.when(j == 0)
    def _init():
        out_ref[...] = jnp.zeros_like(out_ref)

    Ht = hmt_ref[...]                          # (TM, N) bf16, 0/1 incidence
    deg = deg_ref[...]                         # (TM, 1) f32, exact hyperedge sizes
    has_any = deg > 0.0                        # padded rows -> 0 scaling below
    safe = jnp.maximum(deg, 1.0)
    dis_e = jnp.where(has_any, lax.rsqrt(safe), 0.0)     # deg^-1/2
    b_inv = jnp.where(has_any, 1.0 / safe, 0.0)          # deg^-1

    # Per-hyperedge attention logits for every head at once:
    #   es = dis_e * (Ht @ ((dis_node * x @ Wg) @ AEW)) + bg @ AEW
    es = jnp.dot(Ht, yaew_ref[...], preferred_element_type=f32)   # (TM, heads)
    es = dis_e * es + bgaew_ref[...]

    mask = Ht > 0.0                            # hoisted, reused by every head
    xh_all = xh_ref[...]                       # (N, heads*F) bf16

    for h in range(heads):                     # static, small
        z = es[:, h:h + 1] + nst_ref[h:h + 1, :]              # (TM, N) f32
        z = jnp.where(z > 0, z, NEG_SLOPE * z)                # leaky_relu
        z = jnp.where(mask, z, jnp.float32(-1e30))            # mask non-members
        row_max = jnp.max(z, axis=1, keepdims=True)           # (TM, 1)
        p = jnp.exp(z - row_max)                              # masked -> 0 (real rows)
        denom = jnp.sum(p, axis=1, keepdims=True)             # >= 1 on real rows
        S = p * pl.reciprocal(denom, approx=True)             # attention (TM, N) f32
        # NOTE: padded (all-zero) rows yield S = 1/N, but b_inv == 0 zeroes out1,
        # so their contribution to the second contraction is exactly 0.
        S_bf = S.astype(jnp.bfloat16)                         # single-pass MXU feed
        xh_h = xh_all[:, h * feat:(h + 1) * feat]             # (N, F) bf16
        # nodes -> hyperedges (natural last-dim contraction)
        out1 = b_inv * jnp.dot(S_bf, xh_h, preferred_element_type=f32)   # (TM, F)
        # hyperedges -> nodes, produced lane-dense in N: contract the SMALL out1
        # over TM so the big S never needs a transpose.
        part = lax.dot_general(out1.astype(jnp.bfloat16), S_bf,
                               (((0,), (0,)), ((), ())),
                               preferred_element_type=f32)               # (F, N)
        out_ref[h * feat:(h + 1) * feat, :] += part


def _vmem_limit_bytes(N, heads, F, tile_m):
    """Explicit VMEM budget from actual shapes, clamped to the chip capacity."""
    lane = lambda n: -(-n // 128) * 128
    sub = lambda n: -(-n // 8) * 8
    HF = heads * F
    b = 0
    b += 2 * tile_m * lane(N) * 2          # HmT stream, bf16, double-buffered
    b += 2 * tile_m * 128 * 4              # hyperedge sizes (lane-padded)
    b += 2 * sub(N) * lane(heads) * 2      # y_aew (bf16)
    b += 2 * sub(heads) * lane(N) * 4      # per-node logits (f32, lane-dense)
    b += 2 * sub(N) * lane(HF) * 2         # xh_all (bf16)
    b += 2 * 8 * 128 * 4                   # bg_aew
    b += 2 * sub(HF) * lane(N) * 4         # resident output accumulator
    b += 6 * tile_m * lane(N) * 4          # per-head softmax temporaries (f32)
    limit = max(int(1.25 * b) + (4 << 20), 32 << 20)
    try:
        cap = pltpu.get_tpu_info().vmem_capacity_bytes
    except Exception:
        cap = 64 << 20                      # conservative (v7x physical)
    return int(min(limit, max(cap - (8 << 20), 16 << 20)))


def hgat_forward(x, edge_index, num_hyperedges, Wg, bg, Whg, att_x, att_e, bhg,
                 *, tile_m=256, core_split=1):
    """HGAT forward.  x: (N, C) nodes, edge_index: (2, E) (node, hyperedge-id).

    tile_m: hyperedge rows per grid step (raise to 256-512 on v5e/v6e, keep
    128-256 on v7x).  core_split: set 2 on v7x to put each TensorCore on half
    of the hyperedge-row tiles (partial outputs summed by a trivial XLA add).
    """
    f32, bf16 = jnp.float32, jnp.bfloat16
    N, C = x.shape
    heads, _, F = Whg.shape
    HF = heads * F
    M = int(num_hyperedges)
    assert tile_m % 8 == 0, "tile_m must be a multiple of 8"
    # GCN normalization indexes hyperedge ids in node-id space (reference/PyG
    # semantics) -> requires hyperedge ids < N.
    assert M <= N, "hyperedge ids must be < num_nodes for the GCN generator"

    n_tiles = pl.cdiv(M, tile_m)
    core_split = max(1, min(int(core_split), n_tiles))
    tiles_per_core = pl.cdiv(n_tiles, core_split)
    n_tiles = tiles_per_core * core_split
    M_pad = n_tiles * tile_m

    row, col = edge_index[0], edge_index[1]
    E = row.shape[0]
    ones = jnp.ones((E,), f32)

    # bf16 transposed dense incidence: rows = hyperedges (padded), cols = nodes.
    HmT = jnp.zeros((M_pad, N), f32).at[col, row].set(1.0).astype(bf16)

    # O(E) degree preprocessing (exact integer counts, f32)
    deg_he = jax.ops.segment_sum(ones, col, num_segments=M)        # hyperedge sizes
    deg_pad = jnp.zeros((M_pad, 1), f32).at[:M, 0].set(deg_he)
    deg_dst = jax.ops.segment_sum(ones, col, num_segments=N)       # same, node-id space
    dis_node = jnp.where(deg_dst > 0, lax.rsqrt(deg_dst), 0.0)[:, None]  # (N, 1)
    D = jax.ops.segment_sum(ones, row, num_segments=N)             # node degree
    D_inv = jnp.where(D > 0, 1.0 / D, 0.0)[:, None]                # (N, 1)

    # Head-invariant projections hoisted to XLA (tiny vs. the HmT stream).
    HI = jax.lax.Precision.HIGHEST
    AEW = jnp.einsum("hcf,hf->ch", Whg, att_e[:, 0, :], precision=HI)    # (C, H)
    AXW = jnp.einsum("hcf,hf->ch", Whg, att_x[:, 0, :], precision=HI)    # (C, H)
    W_all = jnp.transpose(Whg, (1, 0, 2)).reshape(C, HF)                 # (C, H*F)
    y = dis_node * jnp.dot(x, Wg, precision=HI)                          # (N, C)
    y_aew = jnp.dot(y, AEW, precision=HI).astype(bf16)                   # (N, H)
    bg_aew = jnp.dot(bg, AEW, precision=HI)                              # (1, H)
    nst = jnp.dot(x, AXW, precision=HI).T                                # (H, N) f32
    xh_all = jnp.dot(x, W_all, precision=HI).astype(bf16)                # (N, H*F)
    bias = bhg.reshape(1, HF)

    const = lambda c, j: (0, 0)
    tile_idx = lambda c, j: (c * tiles_per_core + j, 0)

    acc = pl.pallas_call(
        functools.partial(_hgat_kernel, heads=heads, feat=F),
        out_shape=jax.ShapeDtypeStruct((core_split, HF, N), f32),
        grid_spec=pltpu.PrefetchScalarGridSpec(
            num_scalar_prefetch=0,
            grid=(core_split, tiles_per_core),
            in_specs=[
                # TODO(synk): if profiling shows exposed HmT DMA, raise this spec
                # to pipeline_mode=pl.Buffered(3).
                pl.BlockSpec((tile_m, N), tile_idx),     # HmT tile (bf16, streamed)
                pl.BlockSpec((tile_m, 1), tile_idx),     # hyperedge sizes (f32)
                pl.BlockSpec((N, heads), const),         # y_aew (bf16, resident)
                pl.BlockSpec((heads, N), const),         # per-node logits (f32)
                pl.BlockSpec((N, HF), const),            # xh_all (bf16, resident)
                pl.BlockSpec((1, heads), const),         # bg_aew (f32)
            ],
            out_specs=pl.BlockSpec((None, HF, N), lambda c, j: (c, 0, 0)),
        ),
        compiler_params=pltpu.CompilerParams(
            dimension_semantics=("parallel", "arbitrary"),
            vmem_limit_bytes=_vmem_limit_bytes(N, heads, F, tile_m)),
    )(HmT, deg_pad, y_aew, nst, xh_all, bg_aew)

    # XLA epilogue: combine per-core partials, restore (N, heads*F), normalize.
    out = jnp.sum(acc, axis=0).T
    return D_inv * out + bias


# ------------------------- pure-JAX reference (scatter/segment based) --------
def hgat_reference(x, edge_index, Wg, bg, Whg, att_x, att_e, bhg, num_hyperedges):
    HI = jax.lax.Precision.HIGHEST
    N, _ = x.shape
    heads, _, F = Whg.shape
    row, col = edge_index[0], edge_index[1]
    E = row.shape[0]
    ones = jnp.ones((E,), jnp.float32)
    # GCN hyperedge feature generator
    x1 = jnp.dot(x, Wg, precision=HI)
    deg = jax.ops.segment_sum(ones, col, num_segments=N)
    dis = jnp.where(deg > 0, 1.0 / jnp.sqrt(deg), 0.0)
    norm = dis[row] * dis[col]
    he = jax.ops.segment_sum(norm[:, None] * x1[row], col, num_segments=N) + bg
    # HypergraphConv(use_attention=True)
    M = num_hyperedges
    D = jax.ops.segment_sum(ones, row, num_segments=N)
    D_inv = jnp.where(D > 0, 1.0 / D, 0.0)
    B = jax.ops.segment_sum(ones, col, num_segments=M)
    B_inv = jnp.where(B > 0, 1.0 / B, 0.0)
    outs = []
    for h in range(heads):
        xh = jnp.dot(x, Whg[h], precision=HI)
        eh = jnp.dot(he, Whg[h], precision=HI)
        ns = (xh * att_x[h]).sum(-1)
        es = (eh * att_e[h]).sum(-1)
        z = ns[row] + es[col]
        z = jnp.where(z > 0, z, NEG_SLOPE * z)
        zmax = jax.ops.segment_max(z, col, num_segments=M)
        p = jnp.exp(z - zmax[col])
        psum = jax.ops.segment_sum(p, col, num_segments=M)
        alpha = p / psum[col]
        out1 = B_inv[:, None] * jax.ops.segment_sum(
            alpha[:, None] * xh[row], col, num_segments=M)
        out2 = D_inv[:, None] * jax.ops.segment_sum(
            alpha[:, None] * out1[col], row, num_segments=N)
        outs.append(out2 + bhg[h])
    return jnp.stack(outs, axis=1).reshape(N, heads * F)


def _glorot(key, shape, fan_in, fan_out):
    lim = (6.0 / (fan_in + fan_out)) ** 0.5
    return jax.random.uniform(key, shape, jnp.float32, -lim, lim)


if __name__ == "__main__":
    N, C_in, F_out, HEADS, M = 64, 8, 16, 2, 30
    TILE_M = 8     # -> 4 hyperedge-row tiles (2 padded rows), split over 2 cores

    # deterministic hypergraph: every node joins 3 hyperedges
    edge_set = set()
    for n in range(N):
        edge_set.add((n, n % M))
        edge_set.add((n, (3 * n + 1) % M))
        edge_set.add((n, (7 * n + 5) % M))
    edge_list = sorted(edge_set)
    edge_index = jnp.array(edge_list, dtype=jnp.int32).T            # (2, E)

    key = jax.random.PRNGKey(0)
    k1, k2, k3, k4 = jax.random.split(key, 4)
    # GCNConv(C_in, C_in): glorot weight, zero bias
    Wg = _glorot(k1, (C_in, C_in), C_in, C_in)
    bg = jnp.zeros((1, C_in), jnp.float32)
    # HypergraphConv(C_in, F_out, heads): glorot lin weight, glorot att, zero bias
    Whg = _glorot(k2, (HEADS, C_in, F_out), C_in, HEADS * F_out)
    att = _glorot(k3, (HEADS, 1, 2 * F_out), F_out, F_out)
    att_x = att[..., :F_out]
    att_e = att[..., F_out:]
    bhg = jnp.zeros((HEADS, 1, F_out), jnp.float32)
    x = jax.random.normal(k4, (N, C_in), jnp.float32)

    out = hgat_forward(x, edge_index, M, Wg, bg, Whg, att_x, att_e, bhg,
                       tile_m=TILE_M, core_split=2)
    out = jax.block_until_ready(out)

    ref = hgat_reference(x, edge_index, Wg, bg, Whg, att_x, att_e, bhg, M)
    assert out.shape == (N, HEADS * F_out)
    err = float(jnp.max(jnp.abs(out - ref)))
    # kernel feeds the MXU bf16 operands (f32 accumulate) and uses an approx
    # EUP reciprocal for the softmax denominator; reference runs at HIGHEST
    # precision -> loosened tolerance.
    assert jnp.allclose(out, ref, rtol=5e-2, atol=2e-2), f"max abs err {err}"
    print("KERNEL_OK")
</pallas_src>

<mosaic_0001>
module attributes {stable_mosaic.version = 11 : i64} {
  func.func @_hgat_kernel(%arg0: i32, %arg1: i32, %arg2: memref<8x64xbf16, #tpu.memory_space<vmem>>, %arg3: memref<8x1xf32, #tpu.memory_space<vmem>>, %arg4: memref<64x2xbf16, #tpu.memory_space<vmem>>, %arg5: memref<2x64xf32, #tpu.memory_space<vmem>>, %arg6: memref<64x32xbf16, #tpu.memory_space<vmem>>, %arg7: memref<1x2xf32, #tpu.memory_space<vmem>>, %arg8: memref<1x32x64xf32, #tpu.memory_space<vmem>>) attributes {dimension_semantics = [#tpu.dimension_semantics<parallel>, #tpu.dimension_semantics<arbitrary>], iteration_bounds = array<i64: 2, 2>, scalar_prefetch = 0 : i64, scratch_operands = 0 : i64, tpu.core_type = #tpu.core_type<tc>, window_params = [{transform_indices = @transform_0, window_bounds = array<i64: 8, 64>}, {transform_indices = @transform_1, window_bounds = array<i64: 8, 1>}, {pipeline_mode = #tpu.pipeline_mode<synchronous>, transform_indices = @transform_2, window_bounds = array<i64: 64, 2>}, {pipeline_mode = #tpu.pipeline_mode<synchronous>, transform_indices = @transform_3, window_bounds = array<i64: 2, 64>}, {pipeline_mode = #tpu.pipeline_mode<synchronous>, transform_indices = @transform_4, window_bounds = array<i64: 64, 32>}, {pipeline_mode = #tpu.pipeline_mode<synchronous>, transform_indices = @transform_5, window_bounds = array<i64: 1, 2>}, {transform_indices = @transform_6, window_bounds = array<i64: 1, 32, 64>}]} {
    %c0_i32 = arith.constant 0 : i32
    %0 = arith.cmpi eq, %arg1, %c0_i32 : i32
    %1 = arith.extui %0 : i1 to i32
    %c0_i32_0 = arith.constant 0 : i32
    %2 = arith.cmpi ne, %1, %c0_i32_0 : i32
    scf.if %2 {
      %cst_44 = arith.constant 0.000000e+00 : f32
      %96 = vector.broadcast %cst_44 : f32 to vector<32x64xf32>
      %c0_45 = arith.constant 0 : index
      %c0_46 = arith.constant 0 : index
      %c0_47 = arith.constant 0 : index
      %97 = vector.load %arg8[%c0_45, %c0_46, %c0_47] : memref<1x32x64xf32, #tpu.memory_space<vmem>>, vector<1x32x64xf32>
      %98 = vector.shape_cast %97 : vector<1x32x64xf32> to vector<32x64xf32>
      %99 = vector.shape_cast %96 : vector<32x64xf32> to vector<1x32x64xf32>
      tpu.vector_store %arg8[%c0_45, %c0_46, %c0_47], %99 {strides = array<i32>} : memref<1x32x64xf32, #tpu.memory_space<vmem>>, vector<1x32x64xf32>,
    } else {
    }
    %c0 = arith.constant 0 : index
    %c0_1 = arith.constant 0 : index
    %3 = vector.load %arg2[%c0, %c0_1] : memref<8x64xbf16, #tpu.memory_space<vmem>>, vector<8x64xbf16>
    %c0_2 = arith.constant 0 : index
    %c0_3 = arith.constant 0 : index
    %4 = vector.load %arg3[%c0_2, %c0_3] : memref<8x1xf32, #tpu.memory_space<vmem>>, vector<8x1xf32>
    %cst = arith.constant 0.000000e+00 : f32
    %5 = vector.broadcast %cst : f32 to vector<8x1xf32>
    %6 = arith.cmpf ogt, %4, %5 : vector<8x1xf32>
    %cst_4 = arith.constant 1.000000e+00 : f32
    %7 = vector.broadcast %cst_4 : f32 to vector<8x1xf32>
    %8 = arith.maximumf %4, %7 : vector<8x1xf32>
    %9 = math.rsqrt %8 : vector<8x1xf32>
    %cst_5 = arith.constant 0.000000e+00 : f32
    %10 = vector.broadcast %cst_5 : f32 to vector<8x1xf32>
    %11 = arith.select %6, %9, %10 : vector<8x1xi1>, vector<8x1xf32>
    %cst_6 = arith.constant 1.000000e+00 : f32
    %12 = vector.broadcast %cst_6 : f32 to vector<8x1xf32>
    %13 = arith.divf %12, %8 : vector<8x1xf32>
    %cst_7 = arith.constant 0.000000e+00 : f32
    %14 = vector.broadcast %cst_7 : f32 to vector<8x1xf32>
    %15 = arith.select %6, %13, %14 : vector<8x1xi1>, vector<8x1xf32>
    %c0_8 = arith.constant 0 : index
    %c0_9 = arith.constant 0 : index
    %16 = vector.load %arg4[%c0_8, %c0_9] : memref<64x2xbf16, #tpu.memory_space<vmem>>, vector<64x2xbf16>
    %cst_10 = arith.constant dense<0.000000e+00> : vector<8x2xf32>
    %17 = tpu.matmul %3, %16, %cst_10 {dimension_numbers = #tpu.dot_dimension_numbers<[1], [0], [0], [1], [0, 0, 1, 1], [], []>} : vector<8x64xbf16>, vector<64x2xbf16>, vector<8x2xf32> -> vector<8x2xf32>
    %18 = vector.broadcast %11 : vector<8x1xf32> to vector<8x2xf32>
    %19 = arith.mulf %18, %17 : vector<8x2xf32>
    %c0_11 = arith.constant 0 : index
    %c0_12 = arith.constant 0 : index
    %20 = vector.load %arg7[%c0_11, %c0_12] : memref<1x2xf32, #tpu.memory_space<vmem>>, vector<1x2xf32>
    %21 = vector.broadcast %20 : vector<1x2xf32> to vector<8x2xf32>
    %22 = arith.addf %19, %21 : vector<8x2xf32>
    %cst_13 = arith.constant 0.000000e+00 : bf16
    %23 = vector.broadcast %cst_13 : bf16 to vector<8x64xbf16>
    %24 = arith.cmpf ogt, %3, %23 : vector<8x64xbf16>
    %c0_14 = arith.constant 0 : index
    %c0_15 = arith.constant 0 : index
    %25 = vector.load %arg6[%c0_14, %c0_15] : memref<64x32xbf16, #tpu.memory_space<vmem>>, vector<64x32xbf16>
    %26 = vector.extract_strided_slice %22 {offsets = [0, 0], sizes = [8, 1], strides = [1, 1]} : vector<8x2xf32> to vector<8x1xf32>
    %c0_16 = arith.constant 0 : index
    %c0_17 = arith.constant 0 : index
    %27 = vector.load %arg5[%c0_16, %c0_17] : memref<2x64xf32, #tpu.memory_space<vmem>>, vector<1x64xf32>
    %28 = vector.broadcast %26 : vector<8x1xf32> to vector<8x64xf32>
    %29 = vector.broadcast %27 : vector<1x64xf32> to vector<8x64xf32>
    %30 = arith.addf %28, %29 : vector<8x64xf32>
    %cst_18 = arith.constant 0.000000e+00 : f32
    %31 = vector.broadcast %cst_18 : f32 to vector<8x64xf32>
    %32 = arith.cmpf ogt, %30, %31 : vector<8x64xf32>
    %cst_19 = arith.constant 2.000000e-01 : f32
    %33 = vector.broadcast %cst_19 : f32 to vector<8x64xf32>
    %34 = arith.mulf %33, %30 : vector<8x64xf32>
    %35 = arith.select %32, %30, %34 : vector<8x64xi1>, vector<8x64xf32>
    %cst_20 = arith.constant -1.000000e+30 : f32
    %36 = vector.broadcast %cst_20 : f32 to vector<8x64xf32>
    %37 = arith.select %24, %35, %36 : vector<8x64xi1>, vector<8x64xf32>
    %cst_21 = arith.constant dense<0xFF800000> : vector<8xf32>
    %38 = vector.multi_reduction <maximumf>, %37, %cst_21 [1] : vector<8x64xf32> to vector<8xf32>
    %39 = vector.shape_cast %38 : vector<8xf32> to vector<8x1xf32>
    %40 = vector.broadcast %39 : vector<8x1xf32> to vector<8x64xf32>
    %41 = arith.subf %37, %40 : vector<8x64xf32>
    %42 = math.exp %41 : vector<8x64xf32>
    %cst_22 = arith.constant dense<0.000000e+00> : vector<8xf32>
    %43 = vector.multi_reduction <add>, %42, %cst_22 [1] : vector<8x64xf32> to vector<8xf32>
    %44 = vector.shape_cast %43 : vector<8xf32> to vector<8x1xf32>
    %45 = tpu.reciprocal %44 {approx = true} : vector<8x1xf32> -> vector<8x1xf32>
    %46 = vector.broadcast %45 : vector<8x1xf32> to vector<8x64xf32>
    %47 = arith.mulf %42, %46 : vector<8x64xf32>
    %48 = arith.truncf %47 : vector<8x64xf32> to vector<8x64xbf16>
    %49 = vector.extract_strided_slice %25 {offsets = [0, 0], sizes = [64, 16], strides = [1, 1]} : vector<64x32xbf16> to vector<64x16xbf16>
    %cst_23 = arith.constant dense<0.000000e+00> : vector<8x16xf32>
    %50 = tpu.matmul %48, %49, %cst_23 {dimension_numbers = #tpu.dot_dimension_numbers<[1], [0], [0], [1], [0, 0, 1, 1], [], []>} : vector<8x64xbf16>, vector<64x16xbf16>, vector<8x16xf32> -> vector<8x16xf32>
    %51 = vector.broadcast %15 : vector<8x1xf32> to vector<8x16xf32>
    %52 = arith.mulf %51, %50 : vector<8x16xf32>
    %53 = arith.truncf %52 : vector<8x16xf32> to vector<8x16xbf16>
    %cst_24 = arith.constant dense<0.000000e+00> : vector<16x64xf32>
    %54 = tpu.matmul %53, %48, %cst_24 {dimension_numbers = #tpu.dot_dimension_numbers<[0], [0], [1], [1], [0, 1, 1, 1], [], []>} : vector<8x16xbf16>, vector<8x64xbf16>, vector<16x64xf32> -> vector<16x64xf32>
    %c0_25 = arith.constant 0 : index
    %c0_26 = arith.constant 0 : index
    %c0_27 = arith.constant 0 : index
    %55 = vector.load %arg8[%c0_25, %c0_26, %c0_27] : memref<1x32x64xf32, #tpu.memory_space<vmem>>, vector<1x16x64xf32>
    %56 = vector.shape_cast %55 : vector<1x16x64xf32> to vector<16x64xf32>
    %57 = arith.addf %56, %54 : vector<16x64xf32>
    %c0_28 = arith.constant 0 : index
    %c0_29 = arith.constant 0 : index
    %c0_30 = arith.constant 0 : index
    %58 = vector.load %arg8[%c0_28, %c0_29, %c0_30] : memref<1x32x64xf32, #tpu.memory_space<vmem>>, vector<1x16x64xf32>
    %59 = vector.shape_cast %58 : vector<1x16x64xf32> to vector<16x64xf32>
    %60 = vector.shape_cast %57 : vector<16x64xf32> to vector<1x16x64xf32>
    tpu.vector_store %arg8[%c0_28, %c0_29, %c0_30], %60 {strides = array<i32>} : memref<1x32x64xf32, #tpu.memory_space<vmem>>, vector<1x16x64xf32>,
    %61 = vector.extract_strided_slice %22 {offsets = [0, 1], sizes = [8, 1], strides = [1, 1]} : vector<8x2xf32> to vector<8x1xf32>
    %c1 = arith.constant 1 : index
    %c0_31 = arith.constant 0 : index
    %62 = vector.load %arg5[%c1, %c0_31] : memref<2x64xf32, #tpu.memory_space<vmem>>, vector<1x64xf32>
    %63 = vector.broadcast %61 : vector<8x1xf32> to vector<8x64xf32>
    %64 = vector.broadcast %62 : vector<1x64xf32> to vector<8x64xf32>
    %65 = arith.addf %63, %64 : vector<8x64xf32>
    %cst_32 = arith.constant 0.000000e+00 : f32
    %66 = vector.broadcast %cst_32 : f32 to vector<8x64xf32>
    %67 = arith.cmpf ogt, %65, %66 : vector<8x64xf32>
    %cst_33 = arith.constant 2.000000e-01 : f32
    %68 = vector.broadcast %cst_33 : f32 to vector<8x64xf32>
    %69 = arith.mulf %68, %65 : vector<8x64xf32>
    %70 = arith.select %67, %65, %69 : vector<8x64xi1>, vector<8x64xf32>
    %cst_34 = arith.constant -1.000000e+30 : f32
    %71 = vector.broadcast %cst_34 : f32 to vector<8x64xf32>
    %72 = arith.select %24, %70, %71 : vector<8x64xi1>, vector<8x64xf32>
    %cst_35 = arith.constant dense<0xFF800000> : vector<8xf32>
    %73 = vector.multi_reduction <maximumf>, %72, %cst_35 [1] : vector<8x64xf32> to vector<8xf32>
    %74 = vector.shape_cast %73 : vector<8xf32> to vector<8x1xf32>
    %75 = vector.broadcast %74 : vector<8x1xf32> to vector<8x64xf32>
    %76 = arith.subf %72, %75 : vector<8x64xf32>
    %77 = math.exp %76 : vector<8x64xf32>
    %cst_36 = arith.constant dense<0.000000e+00> : vector<8xf32>
    %78 = vector.multi_reduction <add>, %77, %cst_36 [1] : vector<8x64xf32> to vector<8xf32>
    %79 = vector.shape_cast %78 : vector<8xf32> to vector<8x1xf32>
    %80 = tpu.reciprocal %79 {approx = true} : vector<8x1xf32> -> vector<8x1xf32>
    %81 = vector.broadcast %80 : vector<8x1xf32> to vector<8x64xf32>
    %82 = arith.mulf %77, %81 : vector<8x64xf32>
    %83 = arith.truncf %82 : vector<8x64xf32> to vector<8x64xbf16>
    %84 = vector.extract_strided_slice %25 {offsets = [0, 16], sizes = [64, 16], strides = [1, 1]} : vector<64x32xbf16> to vector<64x16xbf16>
    %cst_37 = arith.constant dense<0.000000e+00> : vector<8x16xf32>
    %85 = tpu.matmul %83, %84, %cst_37 {dimension_numbers = #tpu.dot_dimension_numbers<[1], [0], [0], [1], [0, 0, 1, 1], [], []>} : vector<8x64xbf16>, vector<64x16xbf16>, vector<8x16xf32> -> vector<8x16xf32>
    %86 = vector.broadcast %15 : vector<8x1xf32> to vector<8x16xf32>
    %87 = arith.mulf %86, %85 : vector<8x16xf32>
    %88 = arith.truncf %87 : vector<8x16xf32> to vector<8x16xbf16>
    %cst_38 = arith.constant dense<0.000000e+00> : vector<16x64xf32>
    %89 = tpu.matmul %88, %83, %cst_38 {dimension_numbers = #tpu.dot_dimension_numbers<[0], [0], [1], [1], [0, 1, 1, 1], [], []>} : vector<8x16xbf16>, vector<8x64xbf16>, vector<16x64xf32> -> vector<16x64xf32>
    %c0_39 = arith.constant 0 : index
    %c16 = arith.constant 16 : index
    %c0_40 = arith.constant 0 : index
    %90 = vector.load %arg8[%c0_39, %c16, %c0_40] : memref<1x32x64xf32, #tpu.memory_space<vmem>>, vector<1x16x64xf32>
    %91 = vector.shape_cast %90 : vector<1x16x64xf32> to vector<16x64xf32>
    %92 = arith.addf %91, %89 : vector<16x64xf32>
    %c0_41 = arith.constant 0 : index
    %c16_42 = arith.constant 16 : index
    %c0_43 = arith.constant 0 : index
    %93 = vector.load %arg8[%c0_41, %c16_42, %c0_43] : memref<1x32x64xf32, #tpu.memory_space<vmem>>, vector<1x16x64xf32>
    %94 = vector.shape_cast %93 : vector<1x16x64xf32> to vector<16x64xf32>
    %95 = vector.shape_cast %92 : vector<16x64xf32> to vector<1x16x64xf32>
    tpu.vector_store %arg8[%c0_41, %c16_42, %c0_43], %95 {strides = array<i32>} : memref<1x32x64xf32, #tpu.memory_space<vmem>>, vector<1x16x64xf32>,
    return
  }
  func.func @transform_0(%arg0: i32, %arg1: i32) -> (i32, i32) {
    %c2_i32 = arith.constant 2 : i32
    %0 = arith.muli %arg0, %c2_i32 : i32
    %1 = arith.addi %0, %arg1 : i32
    %c0_i32 = arith.constant 0 : i32
    %c0_i32_0 = arith.constant 0 : i32
    return %1, %c0_i32 : i32, i32
  }
  func.func @transform_1(%arg0: i32, %arg1: i32) -> (i32, i32) {
    %c2_i32 = arith.constant 2 : i32
    %0 = arith.muli %arg0, %c2_i32 : i32
    %1 = arith.addi %0, %arg1 : i32
    %c0_i32 = arith.constant 0 : i32
    %c0_i32_0 = arith.constant 0 : i32
    return %1, %c0_i32 : i32, i32
  }
  func.func @transform_2(%arg0: i32, %arg1: i32) -> (i32, i32) {
    %c0_i32 = arith.constant 0 : i32
    %c0_i32_0 = arith.constant 0 : i32
    %c0_i32_1 = arith.constant 0 : i32
    return %c0_i32, %c0_i32_0 : i32, i32
  }
  func.func @transform_3(%arg0: i32, %arg1: i32) -> (i32, i32) {
    %c0_i32 = arith.constant 0 : i32
    %c0_i32_0 = arith.constant 0 : i32
    %c0_i32_1 = arith.constant 0 : i32
    return %c0_i32, %c0_i32_0 : i32, i32
  }
  func.func @transform_4(%arg0: i32, %arg1: i32) -> (i32, i32) {
    %c0_i32 = arith.constant 0 : i32
    %c0_i32_0 = arith.constant 0 : i32
    %c0_i32_1 = arith.constant 0 : i32
    return %c0_i32, %c0_i32_0 : i32, i32
  }
  func.func @transform_5(%arg0: i32, %arg1: i32) -> (i32, i32) {
    %c0_i32 = arith.constant 0 : i32
    %c0_i32_0 = arith.constant 0 : i32
    %c0_i32_1 = arith.constant 0 : i32
    return %c0_i32, %c0_i32_0 : i32, i32
  }
  func.func @transform_6(%arg0: i32, %arg1: i32) -> (i32, i32, i32) {
    %c0_i32 = arith.constant 0 : i32
    %c0_i32_0 = arith.constant 0 : i32
    %c0_i32_1 = arith.constant 0 : i32
    return %arg0, %c0_i32, %c0_i32_0 : i32, i32, i32
  }
}

</mosaic_0001>

<bundles_post_ra>
// kernel: tpu_custom_call.1
= control target key start
LH: loop header
LB: loop body
LE: loop exit
PB: predicated region body
PF: predicated region fallthrough
CT: control target
= control target key end

     0   :  { %11 = vsyncpa [#allocation3], 0  ;;  %s1438_s0 = inlined_call_operand.vmem [shape: bf16[32,64], index: 0, kind: input, shape index: {}]   ;;  %s1439_s1 = inlined_call_operand.vmem [shape: f32[32,1], index: 1, kind: input, shape index: {}]   ;;  %s1440_s2 = inlined_call_operand.vmem [shape: bf16[64,2], index: 2, kind: input, shape index: {}]   ;;  %s1441_s3 = inlined_call_operand.vmem [shape: f32[2,64], index: 3, kind: input, shape index: {}]   ;;  %s1442_s4 = inlined_call_operand.vmem [shape: bf16[64,32], index: 4, kind: input, shape index: {}]   ;;  %s1443_s5 = inlined_call_operand.vmem [shape: f32[1,2], index: 5, kind: input, shape index: {}]   ;;  %s1444_s6 = inlined_call_operand.hbm [shape: f32[2,32,64], index: 6, kind: output, shape index: {}]  }
   0x1   :  { %13 = vsyncpa [#allocation3 + $0x1], 0  ;;  %s1195_s21 = smov 0   ;;  %s1197_s22 = smov 0  }
   0x2   :  { %s1199_s23 = smov 0   ;;  %s1201_s24 = smov 0  }
   0x3   :  { %s1203_s25 = smov 0   ;;  %s1205_s26 = smov 0  }
   0x4   :  { %s1207_s27 = smov 0   ;;  %s1209_s28 = smov 0  }
   0x5 LB: > { %s848_s29 = sadd.s32 4294967295, %s1149_s28   ;;  %s849_s30 = sadd.s32 4294967294, %s1149_s28   ;;  %s1149_s28 = sphi %s1209_s28, %s19_s28   ;;  %s1145_s27 = sphi %s1207_s27, %s1458_s27   ;;  %s1141_s26 = sphi %s1205_s26, %s1457_s26   ;;  %s1137_s25 = sphi %s1203_s25, %s1456_s25   ;;  %s1133_s24 = sphi %s1201_s24, %s1455_s24   ;;  %s1129_s23 = sphi %s1199_s23, %s1454_s23   ;;  %s1125_s22 = sphi %s1197_s22, %s1453_s22   ;;  %s1121_s21 = sphi %s1195_s21, %s1452_s21  }
   0x6   : > { %s28_s7 = sadd.s32 1, %s1141_s26  ;;  %s31_s8 = sadd.s32 1, %s1145_s27 }
   0x7   : > { %p29_p0 = scmp.ge.s32.totalorder %s28_s7, 2  ;;  %p192_p1 = scmp.ne.s32.totalorder %s1129_s23, %s1125_s22 }
   0x8   : > { %p193_p2 = scmp.eq.s32.totalorder %s848_s29, 3  ;;  %p198_p4 = scmp.ne.s32.totalorder %s1125_s22, %s1121_s21 }
   0x9   : > { %s1460_s7 = smov (%p29_p0, %s28_s7), 0  ;;  %s1462_s8 = smov (!%p29_p0, %s31_s8), %s1145_s27 }
   0xa   : > { %1446 = sst [smem:[#allocation5_spill]] %s1460_s7  ;;  %p1244_p3 = por %p193_p2, %p192_p1 }
   0xb   : > { %p33_p5 = scmp.ge.s32.totalorder %s1462_s8, 2  ;;  %p199_p6 = scmp.eq.s32.totalorder %s849_s30, 3 }
   0xc   : > { %p856_p7 = scmp.ge.s32.totalorder %s1149_s28, 1  ;;  %p251_p8 = scmp.lt.s32.totalorder %s1149_s28, 5 }
   0xd   : > { %s1464_s8 = smov (%p33_p5, %s1462_s8), 0  ;;  %p1254_p9 = por %p199_p6, %p198_p4 }
   0xe   : > { %1448 = sst [smem:[#allocation6_spill]] %s1464_s8  ;;  %p252_p10 = pnand %p856_p7, %p251_p8 }
   0xf   : > { %s179_s11 = ssub.s32 %s1145_s27, %s1464_s8  ;;  %s182_s12 = sadd.s32 1, %s1129_s23 }
  0x10   : > { %p180_p11 = scmp.eq.s32.totalorder %s179_s11, 0  ;;  %255 = sbr.rel (%p252_p10) target bundleno = 1279 (0x4ff), region = 44 }
  0x11   : > { %s285_s14 = sand.u32 (!%p252_p10), 1, %s1125_s22   ;;  %s858_s15 = sshll.u32 (!%p252_p10), %s1137_s25, 1 }
  0x12   : > { %s1262_s13 = scalar_select %p180_p11, %s1129_s23, %s182_s12  }
  0x13   : > { %s857_s16 = sshll.u32 (!%p252_p10), %s285_s14, 5  ;;  %s289_s17 = sadd.s32 (!%p252_p10), %s1133_s24, %s858_s15 }
  0x14   : > { %p290_p12 = scmp.lt.s32.totalorder (!%p252_p10), %s289_s17, 3  ;;  %s1277_s7 = scalar_lea.vmem (!%p252_p10), [#allocation2], %s857_s16 }
  0x15   : > { %p862_p13 = scmp.ne.s32.totalorder (!%p252_p10), %s1133_s24, 0 }
  0x17   : > { %s1466_s17 = smov (!%p290_p12, %s289_s17), 3  ;;  %310 = sbr.rel (%p862_p13) target bundleno = 30 (0x1e), region = 48 }
  0x18   : > { %s859_s18 = sshll.u32 %s1466_s17, 2  ;;  %s861_s19 = sshll.u32 %s1466_s17, 3  ;;  %vm311_vm0 = vcmask (!%p862_p13), 523264   ;;  %v1151_v0 = vmov (!%p862_p13), 0.0  }
  0x19   : > { %s1272_s30 = scalar_lea.vmem %s1438_s0, %s859_s18  ;;  %s301_s8 = scalar_lea.vmem %s1439_s1, %s861_s19  ;;  %312 = vst.msk [vmem:[%s1277_s7] sm:$0xff] (!%p862_p13), %vm311_vm0, %v1151_v0  ;;  %313 = vst.msk [vmem:[%s1277_s7 + $0x8] sm:$0xff] (!%p862_p13), %vm311_vm0, %v1151_v0 }
  0x1a   : > { %314 = vst.msk [vmem:[%s1277_s7 + $0x10] sm:$0xff] (!%p862_p13), %vm311_vm0, %v1151_v0  ;;  %315 = vst.msk [vmem:[%s1277_s7 + $0x18] sm:$0xff] (!%p862_p13), %vm311_vm0, %v1151_v0 }
  0x1e PF: > { %v1035_v1 = vld [vmem:[%s1440_s2] sm:$0xff]   ;;  %v1152_v2 = vmov 0.0   ;;  %v1036_v3 = vld [vmem:[%s1440_s2 + $0x8] sm:$0xff]   ;;  %vm1153_vm1 = vmmov 0   ;;  %v1154_v4 = vmov 0   ;;  %v1037_v6 = vld [vmem:[%s1440_s2 + $0x10] sm:$0xff]  }
  0x1f   : > { %904 = vmatprep.subr.bf16.mxu0 %v1152_v2  ;;  %916 = vmatprep.subr.bf16.mxu1 %v1152_v2  ;;  %v1297_v5 = vld [vmem:[%s301_s8] sm:$0xff]  ;;  %v1038_v8 = vld [vmem:[%s1440_s2 + $0x18] sm:$0xff]   ;;  %vm357_vm2 = vcmask 523264   ;;  %v1155_v12 = vmov 1   ;;  %v1039_v37 = vld [vmem:[%s1442_s4 + $0x8] sm:$0xff]   ;;  %s1156_s18 = smov 112  }
  0x20   : > { %905 = vmatpush3.bf16.msra.mxu0 %v1035_v1  ;;  %912 = vmatprep.mubr.msk.bf16.mxu0 %vm1153_vm1, %v1152_v2  ;;  %v319_v7 = vmax.f32 %v1297_v5, 1.0  ;;  %v316_v9 = vld [vmem:[%s1272_s30] sm:$0xf]  ;;  %vm318_vm3 = vcmp.gt.f32.partialorder %v1297_v5, 0.0  ;;  %v1041_v39 = vld [vmem:[%s1442_s4 + $0x10] sm:$0xff]   ;;  %v1042_v40 = vld [vmem:[%s1442_s4 + $0x18] sm:$0xff]  }
  0x21   : > { %906 = vmatprep.subr.bf16.mxu0 %v1152_v2  ;;  %924 = vmatprep.mubr.msk.bf16.mxu1 %vm1153_vm1, %v1152_v2  ;;  %v868_v15 = vld [vmem:[%s1443_s5] ss:$0 sm:$0xff]  ;;  %vm415_vm4 = vcmp.gt.bf16.partialorder %v316_v9, 0  ;;  %v876_v22 = vld [vmem:[%s1441_s3 + $0x1] ss:$0 sm:$0xff]  ;;  %vm548_vm8 = vcmask 1043456  }
  0x22   : > { %1031 = vset.pattern.permute.xlu0 %v1154_v4  ;;  %1043 = vrsqrt.f32 %v319_v7  ;;  %1032 = vset.pattern.permute.xlu1 %v1155_v12  ;;  %v438_v21 = vsel %vm415_vm4, 65537, %v1154_v4  ;;  %v869_v23 = vld [vmem:[%s1441_s3] ss:$0 sm:$0xff]  ;;  %vm544_vm9 = vcmask 64512   ;;  %s884_s12 = sshll.u32 %s1137_s25, 9  ;;  %s763_s15 = sshll.u32 %s1277_s7, 4  ;;  %s1378_s15 = int_to_ptr.vmem [resolvable:$true] %s763_s15 }
  0x23   : > { %v439_v24 = vunpack.c.l.b16 %v438_v21  ;;  %v1040_v38 = vld [vmem:[%s1442_s4] sm:$0xff]   ;;  %v593_v21 = vld [vmem:[%s1277_s7 + $0x8] sm:$0xff]  ;;  %s1376_s16 = scalar_lea.hbm %s1444_s6, %s884_s12  ;;  %s1386_s25 = scalar_lea.sflag [#allocation3], %s285_s14 }
  0x24   : > { %907 = vmatpush3.bf16.msra.mxu0 %v1036_v3  ;;  %917 = vmatpush3.bf16.msra.mxu1 %v1040_v38  ;;  %s1157_s19 = smov [#allocation2]  }
  0x25   : > { %908 = vmatprep.subr.bf16.mxu0 %v1152_v2  ;;  %vm440_vm5 = vcmp.ne.s32.totalorder %v439_v24, 0  ;;  %918 = vmatprep.subr.bf16.mxu1 %v1152_v2  ;;  %s1059_s20 = sshll.u32 %s1157_s19, 4  ;;  %s1060_s20 = int_to_ptr.vmem [resolvable:$false] %s1059_s20 }
  0x26   : > { %s1061_s29 = scalar_lea.vmem %s1060_s20, 1024  ;;  %p1062_p4 = scmp.lt.s32.totalorder %s1378_s15, %s1060_s20 }
  0x28   : > { %909 = vmatpush3.bf16.msra.mxu0 %v1037_v6  ;;  %919 = vmatpush3.bf16.msra.mxu1 %v1039_v37 }
  0x29   : > { %910 = vmatprep.subr.bf16.mxu0 %v1152_v2  ;;  %920 = vmatprep.subr.bf16.mxu1 %v1152_v2 }
  0x2c   : > { %911 = vmatpush3.bf16.msra.mxu0 %v1038_v8  ;;  %v1044_v10 = vpop.eup %1043  ;;  %921 = vmatpush3.bf16.msra.mxu1 %v1041_v39 }
  0x2d   : > { %928 = vmatprep.subr.bf16.mxu0 %v1152_v2  ;;  %v321_v11 = vsel %vm318_vm3, %v1044_v10, 0.0  ;;  %922 = vmatprep.subr.bf16.mxu1 %v1152_v2 }
  0x2e   : > { %403 = vperm.xlu0 %1031, %v321_v11  }
  0x2f   : > { %913 = vmatmul.mubr.msk.bf16.vlgmr.msra.gmra.mrb[0].mxu0 %vm357_vm2, %v316_v9 }
  0x30   : > { %930 = vmatprep.mubr.msk.bf16.mxu0 %vm1153_vm1, %v1152_v2  ;;  %923 = vmatpush3.bf16.msra.mxu1 %v1042_v40 }
  0x31   : > { %934 = vmatprep.subr.bf16.mxu1 %v1152_v2 }
  0xad   : > { %v404_v13 = vpop.permute.xlu0 %403 }
 0x102   : > { %v395_v14 = vpop.f32.mrb[0].mxu0 }
 0x103   : > { %v406_v16 = vmul.f32 %v404_v13, %v395_v14  ;;  %v914_v17 = vpop.f32.mrb[1].mxu0 }
 0x104   : > { %v398_v18 = vpop.f32.mrb[2].mxu0 }
 0x105   : > { %v915_v19 = vpop.f32.mrb[3].mxu0  ;;  %v414_v20 = vadd.f32 %v868_v15, %v406_v16 }
 0x106   : > { %v592_v19 = vld [vmem:[%s1277_s7] sm:$0xff] }
 0x107   : > { %600 = vperm.xlu1 %1032, %v414_v20   ;;  %427 = vperm.xlu0 %1031, %v414_v20  }
 0x10b   : > { %1033 = vset.pattern.permute.xlu1 %v1154_v4 }
 0x186   : > { %v601_v25 = vpop.permute.xlu1 %600  ;;  %v428_v26 = vpop.permute.xlu0 %427 }
 0x187   : > { %v607_v27 = vadd.f32 %v876_v22, %v601_v25  ;;  %v434_v28 = vadd.f32 %v869_v23, %v428_v26 }
 0x189   : > { %v609_v29 = vmul.f32 0.2, %v607_v27  ;;  %v436_v30 = vmul.f32 0.2, %v434_v28  ;;  %vm608_vm6 = vcmp.gt.f32.partialorder %v607_v27, 0.0  ;;  %vm435_vm7 = vcmp.gt.f32.partialorder %v434_v28, 0.0 }
 0x18b   : > { %v610_v31 = vsel %vm608_vm6, %v607_v27, %v609_v29  ;;  %v437_v32 = vsel %vm435_vm7, %v434_v28, %v436_v30  ;;  %v743_v27 = vld [vmem:[%s1277_s7 + $0x10] sm:$0xff]  ;;  %v744_v28 = vld [vmem:[%s1277_s7 + $0x18] sm:$0xff] }
 0x18c   : > { %v611_v33 = vsel %vm440_vm5, %v610_v31, -1e+30  ;;  %v441_v34 = vsel %vm440_vm5, %v437_v32, -1e+30 }
 0x18d   : > { %v612_v35 = vsel %vm357_vm2, %v611_v33, -inf  ;;  %v442_v36 = vsel %vm357_vm2, %v441_v34, -inf }
 0x18e   : > { %613 = vmax.xlane.f32.xlu0 %v612_v35  ;;  %443 = vmax.xlane.f32.xlu1 %v442_v36 }
 0x19f   : > { %626 = vrot.lane.b32.xlu1 %v1039_v37, %s1156_s18 }
 0x21b   : > { %v444_v41 = vpop.xlane.xlu1 %443  ;;  %v614_v42 = vpop.xlane.xlu0 %613 }
 0x21c   : > { %v445_v43 = vsub.f32 %v441_v34, %v444_v41  ;;  %v615_v44 = vsub.f32 %v611_v33, %v614_v42 }
 0x21e   : > { %v446_v45 = vmul.f32 1.442695, %v445_v43  ;;  %v616_v46 = vmul.f32 1.442695, %v615_v44 }
 0x21f   : > { %v627_v53 = vpop.permute.xlu1 %626 }
 0x220   : > { %1045 = vpow2.f32 %v446_v45 }
 0x221   : > { %1047 = vpow2.f32 %v616_v46 }
 0x222   : > { %1049 = vrcp.f32 %v319_v7 }
 0x22a   : > { %v1046_v47 = vpop.eup %1045 }
 0x22b   : > { %v1048_v48 = vpop.eup %1047  ;;  %v448_v49 = vsel %vm357_vm2, %v1046_v47, 0.0 }
 0x22c   : > { %449 = vadd.xlane.f32.xlu0 %v448_v49  ;;  %v618_v50 = vsel %vm357_vm2, %v1048_v48, 0.0  ;;  %v1050_v51 = vpop.eup %1049 }
 0x22d   : > { %619 = vadd.xlane.f32.xlu1 %v618_v50  ;;  %v324_v52 = vsel %vm318_vm3, %v1050_v51, 0.0 }
 0x23e   : > { %628 = vrot.lane.b32.xlu1 %v1041_v39, %s1156_s18 }
 0x242   : > { %624 = vrot.lane.b32.xlu0 %v1040_v38, %s1156_s18  ;;  %523 = vperm.xlu1 %1033, %v324_v52  }
 0x246   : > { %630 = vrot.lane.b32.xlu0 %v1042_v40, %s1156_s18  ;;  %s1055_s18 = scalar_lea.vmem %s1378_s15, 512 }
 0x247   : > { %p1056_p0 = scmp.ne.s32.totalorder %s1378_s15, %s1055_s18  ;;  %p1063_p5 = scmp.lt.s32.totalorder %s1061_s29, %s1055_s18 }
 0x249   : > { %p1057_p1 = pnand %p1056_p0, %p1244_p3  ;;  %p1064_p6 = por %p1063_p5, %p1062_p4 }
 0x24b   : > { %p1058_p2 = pneg %p1057_p1 }
 0x24d   : > { %p1065_p7 = pnand %p1064_p6, %p1058_p2 }
 0x2b9   : > { %v450_v54 = vpop.xlane.xlu0 %449 }
 0x2ba   : > { %v620_v55 = vpop.xlane.xlu1 %619  ;;  %1051 = vrcp.f32 %v450_v54 }
 0x2bb   : > { %1053 = vrcp.f32 %v620_v55 }
 0x2bd   : > { %v625_v60 = vpop.permute.xlu0 %624 }
 0x2be   : > { %v629_v1 = vpop.permute.xlu1 %628 }
 0x2c1   : > { %v631_v3 = vpop.permute.xlu0 %630 }
 0x2c2   : > { %v524_v4 = vpop.permute.xlu1 %523 }
 0x2c4   : > { %v1052_v56 = vpop.eup %1051 }
 0x2c5   : > { %v1054_v57 = vpop.eup %1053  ;;  %v452_v58 = vmul.f32 %v1052_v56, %v1046_v47 }
 0x2c6   : > { %v622_v59 = vmul.f32 %v1054_v57, %v1048_v48 }
 0x2c7   : > { %v453_v61 = vpack.c.bf16 %v452_v58, %v452_v58 }
 0x2c8   : > { %v623_v62 = vpack.c.bf16 %v622_v59, %v622_v59 }
 0x2c9   : > { %925 = vmatmul.mubr.msk.bf16.vlgmr.msra.gmra.mrb[0].mxu1 %vm357_vm2, %v453_v61  ;;  %v549_v63 = vsel %vm548_vm8, %v453_v61, 0 }
 0x2ca   : > { %935 = vmatpush3.bf16.msra.mxu1 %v625_v60  ;;  %929 = vmatpush3.bf16.msra.mxu0 %v549_v63  ;;  %v700_v0 = vsel %vm548_vm8, %v623_v62, 0 }
 0x2cb   : > { %936 = vmatprep.subr.bf16.mxu1 %v1152_v2  ;;  %942 = vmatprep.mubr.msk.bf16.mxu1 %vm1153_vm1, %v1152_v2 }
 0x2cc   : > { %946 = vmatprep.subr.bf16.mxu0 %v1152_v2 }
 0x2ce   : > { %937 = vmatpush3.bf16.msra.mxu1 %v627_v53 }
 0x2cf   : > { %938 = vmatprep.subr.bf16.mxu1 %v1152_v2 }
 0x2d2   : > { %939 = vmatpush3.bf16.msra.mxu1 %v629_v1 }
 0x2d3   : > { %940 = vmatprep.subr.bf16.mxu1 %v1152_v2 }
 0x2d6   : > { %941 = vmatpush3.bf16.msra.mxu1 %v631_v3 }
 0x2d9   : > { %943 = vmatmul.mubr.msk.bf16.vlgmr.msra.gmra.mrb[4].mxu1 %vm357_vm2, %v623_v62 }
 0x39c   : > { %v515_v5 = vpop.f32.mrb[0].mxu1 }
 0x39d   : > { %v526_v6 = vmul.f32 %v524_v4, %v515_v5  ;;  %v926_v7 = vpop.f32.mrb[1].mxu1 }
 0x39e   : > { %v518_v8 = vpop.f32.mrb[2].mxu1 }
 0x39f   : > { %v527_v9 = vpack.c.bf16 %v526_v6, %v526_v6  ;;  %v927_v10 = vpop.f32.mrb[3].mxu1 }
 0x3a1   : > { %528 = vxpose.xlu0.c.b16.start.end [1/1] (short) (narrow) %v527_v9, 16 }
 0x3aa   : > { %1034 = vset.pattern.permute.xlu0 %v1155_v12 }
 0x3ac   : > { %v673_v11 = vpop.f32.mrb[4].mxu1 }
 0x3ad   : > { %v679_v13 = vmul.f32 %v673_v11, %v524_v4  ;;  %v944_v14 = vpop.f32.mrb[5].mxu1 }
 0x3ae   : > { %v676_v15 = vpop.f32.mrb[6].mxu1 }
 0x3af   : > { %v680_v16 = vpack.c.bf16 %v679_v13, %v679_v13  ;;  %v945_v17 = vpop.f32.mrb[7].mxu1 }
 0x3b1   : > { %681 = vxpose.xlu1.c.b16.start.end [1/1] (short) (narrow) %v680_v16, 16 }
 0x407   : > { %v536_v18 = vpop.trf.xlu0 }
 0x408   : > { %931 = vmatmul.mubr.msk.bf16.vlgmr.msra.gmra.mrb[4].mxu0 %vm544_vm9, %v536_v18 }
 0x409   : > { %947 = vmatpush3.bf16.msra.mxu0 %v700_v0  ;;  %948 = vmatprep.mubr.msk.bf16.mxu0 %vm1153_vm1, %v1152_v2 }
 0x417   : > { %v689_v12 = vpop.trf.xlu1 }
 0x418   : > { %949 = vmatmul.mubr.msk.bf16.vlgmr.msra.gmra.mrb[8].mxu0 %vm544_vm9, %v689_v12 }
 0x4db   : > { %v585_v20 = vpop.f32.mrb[4].mxu0 }
 0x4dc   : > { %v594_v22 = vadd.f32 %v592_v19, %v585_v20  ;;  %v932_v23 = vpop.f32.mrb[5].mxu0 }
 0x4dd   : > { %v588_v24 = vpop.f32.mrb[6].mxu0 }
 0x4de   : > { %596 = vst.msk [vmem:[%s1277_s7] sm:$0xff] %vm357_vm2, %v594_v22  ;;  %v595_v25 = vadd.f32 %v593_v21, %v588_v24  ;;  %v933_v26 = vpop.f32.mrb[7].mxu0 }
 0x4e0   : > { %597 = vst.msk [vmem:[%s1277_s7 + $0x8] sm:$0xff] %vm357_vm2, %v595_v25 }
 0x4eb   : > { %v736_v2 = vpop.f32.mrb[8].mxu0 }
 0x4ec   : > { %v745_v29 = vadd.f32 %v743_v27, %v736_v2  ;;  %v950_v30 = vpop.f32.mrb[9].mxu0 }
 0x4ed   : > { %v739_v31 = vpop.f32.mrb[10].mxu0 }
 0x4ee   : > { %747 = vst.msk [vmem:[%s1277_s7 + $0x10] sm:$0xff] %vm357_vm2, %v745_v29  ;;  %v746_v32 = vadd.f32 %v744_v28, %v739_v31  ;;  %v951_v33 = vpop.f32.mrb[11].mxu0 }
 0x4f0   : > { %748 = vst.msk [vmem:[%s1277_s7 + $0x18] sm:$0xff] %vm357_vm2, %v746_v32 }
 0x4f1   : > { %1068 = shalt.err (!%p1065_p7)
}
 0x4f2   : > { %s1069_s7 = scalar_lea.hbm %s1376_s16, 512  ;;  %s1073_s30 = scalar_lea.hbm %s1444_s6, 1024 }
 0x4f3   : > { %p1070_p8 = scmp.ne.s32.totalorder %s1376_s16, %s1069_s7  ;;  %p1074_p12 = scmp.lt.u32.totalorder %s1376_s16, %s1444_s6 }
 0x4f4   : > { %p1075_p13 = scmp.lt.u32.totalorder %s1073_s30, %s1069_s7  ;;  %p1077_p1 = scmp.lt.u32.totalorder %s1069_s7, %s1376_s16 }
 0x4f5   : > { %p1071_p10 = pnand %p1070_p8, %p1244_p3 }
 0x4f6   : > { %p1076_p0 = por %p1075_p13, %p1074_p12 }
 0x4f7   : > { %p1072_p11 = pneg %p1071_p10 }
 0x4f8   : > { %p1078_p2 = por %p1077_p1, %p1076_p0 }
 0x4fa   : > { %p1079_p4 = pnand %p1078_p2, %p1072_p11 }
 0x4fc   : > { %1082 = shalt.err (!%p1079_p4)
}
 0x4fd   : > { %s1158_s17 = smov 128   ;;  %s1159_s24 = smov 8  }
 0x4fe   : > { %952 = dma.vmem_to_hbm [thread:$0]  (%p1244_p3), %s1378_s15, 512, %s1376_s16, %s1386_s25, %s1158_s17, %s1158_s17, %s1159_s24  }
 0x4ff PF: > { %p958_p5 = scmp.ge.s32.totalorder %s1149_s28, 2  ;;  %s778_s18 = sand.u32 1, %s1121_s21  }
 0x500   : > { %s779_s19 = scalar_lea.sflag [#allocation3], %s778_s18 }
 0x501   : > { %p955_p6 = pnand %p958_p5, %p1254_p9 }
 0x503   : > { %1116 = dma.done.wait (!%p955_p6), %s779_s19, 512  }
 0x504   : > { %1118 = vsyncadd (!%p955_p6), %s779_s19, 4294966784  ;;  %s19_s28 = sadd.s32 1, %s1149_s28   ;;  %s1450_s9 = sld [smem:[#allocation5_spill]] }
 0x505   : > { %p16_p7 = scmp.ge.s32.totalorder %s19_s28, 6   ;;  %s1451_s15 = sld [smem:[#allocation6_spill]] }
 0x506   : > { %s1452_s21 = smov %s1125_s22  ;;  %s1453_s22 = smov %s1129_s23 }
 0x507   : > { %s1454_s23 = smov %s1262_s13  ;;  %s1455_s24 = smov %s1141_s26 }
 0x508   : > { %s1456_s25 = smov %s1145_s27  ;;  %18 = sbr.rel (!%p16_p7) target bundleno = 5 (0x5), region = 86 }
 0x50a   : > { %s1457_s26 = smov %s1450_s9 }
 0x50b   : > { %s1458_s27 = smov %s1451_s15 }
 0x50f   :  { %784 = vsyncpa [#allocation3], 1 }
 0x510   :  { %786 = vsyncpa [#allocation3 + $0x1], 1 }

</bundles_post_ra>
